<compile_context>
chip_gen: v6e
topology: v6e:2x2x1
jax: 0.10.0
libtpu: 0.0.40
codegen_flags: <defaults>
</compile_context>

<pallas_src>
import functools

import jax
import jax.numpy as jnp
from jax import lax
from jax.experimental import pallas as pl
from jax.experimental.pallas import tpu as pltpu


_MIB = 1024 * 1024
# VMEM budget for the three streamed, double-buffered activation slabs
# (hidden_states, residual, output). Keeps the kernel comfortably inside
# v7x's 64 MiB physical VMEM and under raised scoped limits on v5e/v6e.
_STREAM_VMEM_BUDGET = 24 * _MIB


def _round_up(x: int, m: int) -> int:
    return ((x + m - 1) // m) * m


@functools.lru_cache(maxsize=None)
def _single_buffer_supported() -> bool:
    """Probe whether pipeline_mode=pl.Buffered(1) (single-buffered constant-index
    inputs) lowers and runs on this jax/libtpu; otherwise use default buffering."""
    try:
        def probe(x_ref, c_ref, o_ref):
            o_ref[...] = x_ref[...] + c_ref[...]

        x = jnp.zeros((16, 128), jnp.float32)
        c = jnp.zeros((1, 128), jnp.float32)
        out = pl.pallas_call(
            probe,
            out_shape=jax.ShapeDtypeStruct((16, 128), jnp.float32),
            grid=(2,),
            in_specs=[
                pl.BlockSpec((8, 128), lambda i: (i, 0)),
                pl.BlockSpec((1, 128), lambda i: (0, 0),
                             pipeline_mode=pl.Buffered(1)),
            ],
            out_specs=pl.BlockSpec((8, 128), lambda i: (i, 0)),
            compiler_params=pltpu.CompilerParams(
                dimension_semantics=("parallel",)),
        )(x, c)
        jax.block_until_ready(out)
        return True
    except Exception:  # any failure -> fall back to default double buffering
        return False


def prepare_dense_weight(dense_weight, *, matmul_in_bf16: bool = True):
    """One-time (weight-load-time) prep: torch (out,in) -> (in,out), optionally bf16.

    Use at model-load time and pass with weight_layout="transposed" so inference
    does not pay a per-call (H,H) transpose + HBM round trip.
    """
    w = jnp.transpose(jnp.asarray(dense_weight))
    return w.astype(jnp.bfloat16 if matmul_in_bf16 else jnp.float32)


def _bert_self_output_kernel(x_ref, res_ref, w_ref, db_ref, g_ref, b_ref, o_ref,
                             *, eps, matmul_in_bf16):
    # x_ref, res_ref, o_ref: (tile_r, H); w_ref: (H, H); db/g/b: (1, H) — all VMEM.
    if matmul_in_bf16:
        # Explicit bf16 operands -> deterministic single-pass MXU; f32 accumulate.
        h = jnp.dot(x_ref[...].astype(jnp.bfloat16),
                    w_ref[...].astype(jnp.bfloat16),
                    preferred_element_type=jnp.float32)
    else:
        # Strict-f32 parity path (multi-pass MXU).
        h = jnp.dot(x_ref[...].astype(jnp.float32),
                    w_ref[...].astype(jnp.float32),
                    preferred_element_type=jnp.float32,
                    precision=lax.Precision.HIGHEST)
    h = h + db_ref[...].astype(jnp.float32)          # dense bias (broadcast over rows)
    # TODO(synk): nn.Dropout is identity at inference; training-mode dropout would
    # be inserted here via pltpu.prng_seed / pltpu.prng_random_bits.
    h = h + res_ref[...].astype(jnp.float32)         # residual add
    # Two-pass mean / centered-variance matches the torch module exactly in f32;
    # the one-pass E[x^2]-mean^2 variant is only worth it if a bundle dump shows
    # the XLU/VALU (not HBM or MXU) saturating.
    u = jnp.mean(h, axis=-1, keepdims=True)
    xc = h - u
    s = jnp.mean(xc * xc, axis=-1, keepdims=True)
    y = xc * lax.rsqrt(s + eps)                      # eps inside the sqrt (TF style), EUP rsqrt
    out = g_ref[...].astype(jnp.float32) * y + b_ref[...].astype(jnp.float32)
    o_ref[...] = out.astype(o_ref.dtype)
    # NOTE: ragged-tail blocks also normalize padded rows; harmless because LN is
    # row-local and Pallas masks out-of-bounds rows on store.


def bert_self_output(hidden_states, input_tensor, dense_weight, dense_bias,
                     ln_weight, ln_bias, *, eps=1e-12, tile_rows=1024,
                     matmul_in_bf16=True, weight_layout="torch"):
    """Fused BertSelfOutput forward: dense + bias + residual + TF-style LayerNorm.

    hidden_states, input_tensor: (..., H)  (f32 or bf16; bf16 halves HBM traffic)
    dense_weight: (H, H). torch nn.Linear layout (out,in) if weight_layout=="torch",
                  or pre-transposed (in,out) (see prepare_dense_weight) if "transposed".
    dense_bias, ln_weight, ln_bias: (H,)
    """
    orig_shape = hidden_states.shape
    H = orig_shape[-1]
    x2 = hidden_states.reshape(-1, H)
    r2 = input_tensor.reshape(-1, H)
    R = x2.shape[0]
    act_dtype = x2.dtype
    act_itemsize = jnp.dtype(act_dtype).itemsize

    # --- weight / params (tiny one-time glue; const-folded under jit when static) ---
    w_dtype = jnp.bfloat16 if matmul_in_bf16 else jnp.float32
    if weight_layout == "torch":
        wt = jnp.transpose(jnp.asarray(dense_weight)).astype(w_dtype)
    elif weight_layout == "transposed":
        wt = jnp.asarray(dense_weight).astype(w_dtype)
    else:
        raise ValueError(f"unknown weight_layout: {weight_layout!r}")
    db = jnp.asarray(dense_bias, jnp.float32).reshape(1, H)
    g = jnp.asarray(ln_weight, jnp.float32).reshape(1, H)
    b = jnp.asarray(ln_bias, jnp.float32).reshape(1, H)

    # --- row tile: large (amortize ~0.35us/step), dtype-aware sublane multiple,
    #     capped by the streamed-VMEM budget, and sized so the grid keeps >=4
    #     steps (>=2 per TensorCore once rows split across v7x's 2 TCs). ---
    sublane = {4: 8, 2: 16, 1: 32}.get(act_itemsize, 8)
    r_pad = _round_up(R, sublane)
    max_tile_by_vmem = max(sublane, _STREAM_VMEM_BUDGET // (6 * H * act_itemsize))
    tile = min(int(tile_rows), max_tile_by_vmem)
    if r_pad >= 4 * sublane:
        tile = min(tile, -(-r_pad // 4))             # keep >= 4 grid steps
    tile = max(sublane, min(_round_up(tile, sublane), r_pad))
    grid = (pl.cdiv(R, tile),)

    # --- resident operands: single-buffer when supported (constant index_map) ---
    single_buf = _single_buffer_supported()

    def resident_spec(shape):
        if single_buf:
            return pl.BlockSpec(shape, lambda i: (0, 0), pipeline_mode=pl.Buffered(1))
        return pl.BlockSpec(shape, lambda i: (0, 0))

    # --- scoped-VMEM limit: footprint + headroom (v5e default is only 16 MiB) ---
    w_itemsize = jnp.dtype(wt.dtype).itemsize
    stream_bytes = 6 * tile * H * act_itemsize                 # x, res, out double-buffered
    resident_bytes = (1 if single_buf else 2) * (H * H * w_itemsize + 3 * H * 4)
    vmem_limit = int(min(64 * _MIB,
                         max(32 * _MIB,
                             (stream_bytes + resident_bytes) * 5 // 4 + 4 * _MIB)))

    cost = pl.CostEstimate(
        flops=2 * R * H * H + 10 * R * H,
        transcendentals=R,                           # one rsqrt per row
        bytes_accessed=3 * R * H * act_itemsize + H * H * w_itemsize + 3 * H * 4,
    )

    out = pl.pallas_call(
        functools.partial(_bert_self_output_kernel, eps=eps,
                          matmul_in_bf16=matmul_in_bf16),
        out_shape=jax.ShapeDtypeStruct((R, H), act_dtype),
        grid=grid,
        in_specs=[
            pl.BlockSpec((tile, H), lambda i: (i, 0)),   # hidden_states rows (streamed)
            pl.BlockSpec((tile, H), lambda i: (i, 0)),   # residual rows (streamed)
            resident_spec((H, H)),                       # dense weight (VMEM-resident)
            resident_spec((1, H)),                       # dense bias   (VMEM-resident)
            resident_spec((1, H)),                       # LN gamma     (VMEM-resident)
            resident_spec((1, H)),                       # LN beta      (VMEM-resident)
        ],
        out_specs=pl.BlockSpec((tile, H), lambda i: (i, 0)),
        compiler_params=pltpu.CompilerParams(
            dimension_semantics=("parallel",),           # rows shard across v7x's 2 TCs
            vmem_limit_bytes=vmem_limit),
        cost_estimate=cost,
    )(x2, r2, wt, db, g, b)
    return out.reshape(orig_shape)


def _reference(hidden_states, input_tensor, dense_weight, dense_bias, ln_weight, ln_bias, eps):
    h = hidden_states.astype(jnp.float32) @ dense_weight.T + dense_bias
    h = h + input_tensor.astype(jnp.float32)
    u = jnp.mean(h, axis=-1, keepdims=True)
    s = jnp.mean((h - u) ** 2, axis=-1, keepdims=True)
    y = (h - u) / jnp.sqrt(s + eps)
    return ln_weight * y + ln_bias


if __name__ == "__main__":
    eps = 1e-12
    key = jax.random.PRNGKey(0)
    k1, k2, k3, k4, k5, k6 = jax.random.split(key, 6)

    # --- small shapes consistent with the module: (batch=2, seq=8, hidden=32) ---
    B, S, H = 2, 8, 32
    hs = jax.random.normal(k1, (B, S, H), dtype=jnp.float32)
    it = jax.random.normal(k2, (B, S, H), dtype=jnp.float32)
    dense_w = 0.05 * jax.random.normal(k3, (H, H), dtype=jnp.float32)
    dense_b = 0.05 * jax.random.normal(k4, (H,), dtype=jnp.float32)
    # Module init is ones/zeros; use non-trivial gamma/beta to actually exercise them.
    ln_w = 1.0 + 0.1 * jax.random.normal(k5, (H,), dtype=jnp.float32)
    ln_b = 0.1 * jax.random.normal(k6, (H,), dtype=jnp.float32)

    ref = _reference(hs, it, dense_w, dense_b, ln_w, ln_b, eps)

    # 1) default path: bf16 MXU matmul, f32 LN math.
    out = bert_self_output(hs, it, dense_w, dense_b, ln_w, ln_b, eps=eps)
    out = jax.block_until_ready(out)
    assert out.shape == hs.shape and out.dtype == hs.dtype
    assert jnp.allclose(out, ref, atol=1e-2, rtol=1e-2), float(jnp.max(jnp.abs(out - ref)))

    # 2) strict-f32 matmul path for tight numerical parity with the torch module.
    out32 = bert_self_output(hs, it, dense_w, dense_b, ln_w, ln_b, eps=eps,
                             matmul_in_bf16=False)
    out32 = jax.block_until_ready(out32)
    assert jnp.allclose(out32, ref, atol=1e-5, rtol=1e-5), float(jnp.max(jnp.abs(out32 - ref)))

    # 3) pre-transposed (weight-load-time) weight + ragged row count (15 rows).
    wt_pre = prepare_dense_weight(dense_w, matmul_in_bf16=True)
    B2, S2 = 3, 5
    hs2 = jax.random.normal(k1, (B2, S2, H), dtype=jnp.float32)
    it2 = jax.random.normal(k2, (B2, S2, H), dtype=jnp.float32)
    ref2 = _reference(hs2, it2, dense_w, dense_b, ln_w, ln_b, eps)
    out2 = bert_self_output(hs2, it2, wt_pre, dense_b, ln_w, ln_b, eps=eps,
                            weight_layout="transposed")
    out2 = jax.block_until_ready(out2)
    assert jnp.allclose(out2, ref2, atol=1e-2, rtol=1e-2), float(jnp.max(jnp.abs(out2 - ref2)))

    # 4) bf16 streamed activations (halves HBM traffic in the HBM-bound regime).
    hsb = hs.astype(jnp.bfloat16)
    itb = it.astype(jnp.bfloat16)
    outb = bert_self_output(hsb, itb, dense_w, dense_b, ln_w, ln_b, eps=eps)
    outb = jax.block_until_ready(outb)
    assert outb.dtype == jnp.bfloat16 and outb.shape == hs.shape
    assert jnp.allclose(outb.astype(jnp.float32), ref, atol=5e-2, rtol=5e-2), \
        float(jnp.max(jnp.abs(outb.astype(jnp.float32) - ref)))

    print("KERNEL_OK")
</pallas_src>

<mosaic_0001>
module attributes {stable_mosaic.version = 11 : i64} {
  func.func @probe(%arg0: i32, %arg1: memref<8x128xf32, #tpu.memory_space<vmem>>, %arg2: memref<1x128xf32, #tpu.memory_space<vmem>>, %arg3: memref<8x128xf32, #tpu.memory_space<vmem>>) attributes {dimension_semantics = [#tpu.dimension_semantics<parallel>], iteration_bounds = array<i64: 2>, scalar_prefetch = 0 : i64, scratch_operands = 0 : i64, tpu.core_type = #tpu.core_type<tc>, window_params = [{transform_indices = @transform_0, window_bounds = array<i64: 8, 128>}, {pipeline_mode = #tpu.pipeline_mode<synchronous>, transform_indices = @transform_1, window_bounds = array<i64: 1, 128>}, {transform_indices = @transform_2, window_bounds = array<i64: 8, 128>}]} {
    %c0 = arith.constant 0 : index
    %c0_0 = arith.constant 0 : index
    %0 = vector.load %arg1[%c0, %c0_0] : memref<8x128xf32, #tpu.memory_space<vmem>>, vector<8x128xf32>
    %c0_1 = arith.constant 0 : index
    %c0_2 = arith.constant 0 : index
    %1 = vector.load %arg2[%c0_1, %c0_2] : memref<1x128xf32, #tpu.memory_space<vmem>>, vector<1x128xf32>
    %2 = vector.broadcast %1 : vector<1x128xf32> to vector<8x128xf32>
    %3 = arith.addf %0, %2 : vector<8x128xf32>
    %c0_3 = arith.constant 0 : index
    %c0_4 = arith.constant 0 : index
    %4 = vector.load %arg3[%c0_3, %c0_4] : memref<8x128xf32, #tpu.memory_space<vmem>>, vector<8x128xf32>
    tpu.vector_store %arg3[%c0_3, %c0_4], %3 {strides = array<i32>} : memref<8x128xf32, #tpu.memory_space<vmem>>, vector<8x128xf32>,
    return
  }
  func.func @transform_0(%arg0: i32) -> (i32, i32) {
    %c0_i32 = arith.constant 0 : i32
    %c0_i32_0 = arith.constant 0 : i32
    return %arg0, %c0_i32 : i32, i32
  }
  func.func @transform_1(%arg0: i32) -> (i32, i32) {
    %c0_i32 = arith.constant 0 : i32
    %c0_i32_0 = arith.constant 0 : i32
    %c0_i32_1 = arith.constant 0 : i32
    return %c0_i32, %c0_i32_0 : i32, i32
  }
  func.func @transform_2(%arg0: i32) -> (i32, i32) {
    %c0_i32 = arith.constant 0 : i32
    %c0_i32_0 = arith.constant 0 : i32
    return %arg0, %c0_i32 : i32, i32
  }
}

module attributes {stable_mosaic.version = 11 : i64} {
  func.func @_bert_self_output_kernel(%arg0: i32, %arg1: memref<16x32xf32, #tpu.memory_space<vmem>>, %arg2: memref<16x32xf32, #tpu.memory_space<vmem>>, %arg3: memref<32x32xbf16, #tpu.memory_space<vmem>>, %arg4: memref<1x32xf32, #tpu.memory_space<vmem>>, %arg5: memref<1x32xf32, #tpu.memory_space<vmem>>, %arg6: memref<1x32xf32, #tpu.memory_space<vmem>>, %arg7: memref<16x32xf32, #tpu.memory_space<vmem>>) attributes {dimension_semantics = [#tpu.dimension_semantics<parallel>], iteration_bounds = array<i64: 1>, scalar_prefetch = 0 : i64, scratch_operands = 0 : i64, tpu.core_type = #tpu.core_type<tc>, window_params = [{transform_indices = @transform_0, window_bounds = array<i64: 16, 32>}, {transform_indices = @transform_1, window_bounds = array<i64: 16, 32>}, {pipeline_mode = #tpu.pipeline_mode<synchronous>, transform_indices = @transform_2, window_bounds = array<i64: 32, 32>}, {pipeline_mode = #tpu.pipeline_mode<synchronous>, transform_indices = @transform_3, window_bounds = array<i64: 1, 32>}, {pipeline_mode = #tpu.pipeline_mode<synchronous>, transform_indices = @transform_4, window_bounds = array<i64: 1, 32>}, {pipeline_mode = #tpu.pipeline_mode<synchronous>, transform_indices = @transform_5, window_bounds = array<i64: 1, 32>}, {transform_indices = @transform_6, window_bounds = array<i64: 16, 32>}]} {
    %c0 = arith.constant 0 : index
    %c0_0 = arith.constant 0 : index
    %0 = vector.load %arg1[%c0, %c0_0] : memref<16x32xf32, #tpu.memory_space<vmem>>, vector<16x32xf32>
    %1 = arith.truncf %0 : vector<16x32xf32> to vector<16x32xbf16>
    %c0_1 = arith.constant 0 : index
    %c0_2 = arith.constant 0 : index
    %2 = vector.load %arg3[%c0_1, %c0_2] : memref<32x32xbf16, #tpu.memory_space<vmem>>, vector<32x32xbf16>
    %cst = arith.constant dense<0.000000e+00> : vector<16x32xf32>
    %3 = tpu.matmul %1, %2, %cst {dimension_numbers = #tpu.dot_dimension_numbers<[1], [0], [0], [1], [0, 0, 1, 1], [], []>} : vector<16x32xbf16>, vector<32x32xbf16>, vector<16x32xf32> -> vector<16x32xf32>
    %c0_3 = arith.constant 0 : index
    %c0_4 = arith.constant 0 : index
    %4 = vector.load %arg4[%c0_3, %c0_4] : memref<1x32xf32, #tpu.memory_space<vmem>>, vector<1x32xf32>
    %5 = vector.broadcast %4 : vector<1x32xf32> to vector<16x32xf32>
    %6 = arith.addf %3, %5 : vector<16x32xf32>
    %c0_5 = arith.constant 0 : index
    %c0_6 = arith.constant 0 : index
    %7 = vector.load %arg2[%c0_5, %c0_6] : memref<16x32xf32, #tpu.memory_space<vmem>>, vector<16x32xf32>
    %8 = arith.addf %6, %7 : vector<16x32xf32>
    %cst_7 = arith.constant dense<0.000000e+00> : vector<16xf32>
    %9 = vector.multi_reduction <add>, %8, %cst_7 [1] : vector<16x32xf32> to vector<16xf32>
    %10 = vector.shape_cast %9 : vector<16xf32> to vector<16x1xf32>
    %cst_8 = arith.constant 3.200000e+01 : f32
    %11 = vector.broadcast %cst_8 : f32 to vector<16x1xf32>
    %12 = arith.divf %10, %11 : vector<16x1xf32>
    %13 = vector.broadcast %12 : vector<16x1xf32> to vector<16x32xf32>
    %14 = arith.subf %8, %13 : vector<16x32xf32>
    %15 = arith.mulf %14, %14 : vector<16x32xf32>
    %cst_9 = arith.constant dense<0.000000e+00> : vector<16xf32>
    %16 = vector.multi_reduction <add>, %15, %cst_9 [1] : vector<16x32xf32> to vector<16xf32>
    %17 = vector.shape_cast %16 : vector<16xf32> to vector<16x1xf32>
    %cst_10 = arith.constant 3.200000e+01 : f32
    %18 = vector.broadcast %cst_10 : f32 to vector<16x1xf32>
    %19 = arith.divf %17, %18 : vector<16x1xf32>
    %cst_11 = arith.constant 9.99999996E-13 : f32
    %20 = vector.broadcast %cst_11 : f32 to vector<16x1xf32>
    %21 = arith.addf %19, %20 : vector<16x1xf32>
    %22 = math.rsqrt %21 : vector<16x1xf32>
    %23 = vector.broadcast %22 : vector<16x1xf32> to vector<16x32xf32>
    %24 = arith.mulf %14, %23 : vector<16x32xf32>
    %c0_12 = arith.constant 0 : index
    %c0_13 = arith.constant 0 : index
    %25 = vector.load %arg5[%c0_12, %c0_13] : memref<1x32xf32, #tpu.memory_space<vmem>>, vector<1x32xf32>
    %26 = vector.broadcast %25 : vector<1x32xf32> to vector<16x32xf32>
    %27 = arith.mulf %26, %24 : vector<16x32xf32>
    %c0_14 = arith.constant 0 : index
    %c0_15 = arith.constant 0 : index
    %28 = vector.load %arg6[%c0_14, %c0_15] : memref<1x32xf32, #tpu.memory_space<vmem>>, vector<1x32xf32>
    %29 = vector.broadcast %28 : vector<1x32xf32> to vector<16x32xf32>
    %30 = arith.addf %27, %29 : vector<16x32xf32>
    %c0_16 = arith.constant 0 : index
    %c0_17 = arith.constant 0 : index
    %31 = vector.load %arg7[%c0_16, %c0_17] : memref<16x32xf32, #tpu.memory_space<vmem>>, vector<16x32xf32>
    tpu.vector_store %arg7[%c0_16, %c0_17], %30 {strides = array<i32>} : memref<16x32xf32, #tpu.memory_space<vmem>>, vector<16x32xf32>,
    return
  }
  func.func @transform_0(%arg0: i32) -> (i32, i32) {
    %c0_i32 = arith.constant 0 : i32
    %c0_i32_0 = arith.constant 0 : i32
    return %arg0, %c0_i32 : i32, i32
  }
  func.func @transform_1(%arg0: i32) -> (i32, i32) {
    %c0_i32 = arith.constant 0 : i32
    %c0_i32_0 = arith.constant 0 : i32
    return %arg0, %c0_i32 : i32, i32
  }
  func.func @transform_2(%arg0: i32) -> (i32, i32) {
    %c0_i32 = arith.constant 0 : i32
    %c0_i32_0 = arith.constant 0 : i32
    %c0_i32_1 = arith.constant 0 : i32
    return %c0_i32, %c0_i32_0 : i32, i32
  }
  func.func @transform_3(%arg0: i32) -> (i32, i32) {
    %c0_i32 = arith.constant 0 : i32
    %c0_i32_0 = arith.constant 0 : i32
    %c0_i32_1 = arith.constant 0 : i32
    return %c0_i32, %c0_i32_0 : i32, i32
  }
  func.func @transform_4(%arg0: i32) -> (i32, i32) {
    %c0_i32 = arith.constant 0 : i32
    %c0_i32_0 = arith.constant 0 : i32
    %c0_i32_1 = arith.constant 0 : i32
    return %c0_i32, %c0_i32_0 : i32, i32
  }
  func.func @transform_5(%arg0: i32) -> (i32, i32) {
    %c0_i32 = arith.constant 0 : i32
    %c0_i32_0 = arith.constant 0 : i32
    %c0_i32_1 = arith.constant 0 : i32
    return %c0_i32, %c0_i32_0 : i32, i32
  }
  func.func @transform_6(%arg0: i32) -> (i32, i32) {
    %c0_i32 = arith.constant 0 : i32
    %c0_i32_0 = arith.constant 0 : i32
    return %arg0, %c0_i32 : i32, i32
  }
}

</mosaic_0001>

<bundles_post_ra>
// kernel: tpu_custom_call.1
= control target key start
LH: loop header
LB: loop body
LE: loop exit
PB: predicated region body
PF: predicated region fallthrough
CT: control target
= control target key end

     0   :  { %7 = vsyncpa [#allocation3], 0  ;;  %s567_s0 = inlined_call_operand.hbm [shape: f32[16,128], index: 0, kind: input, shape index: {}]   ;;  %s568_s1 = inlined_call_operand.vmem [shape: f32[1,128], index: 1, kind: input, shape index: {}]   ;;  %s569_s2 = inlined_call_operand.hbm [shape: f32[16,128], index: 2, kind: output, shape index: {}]  }
   0x1   :  { %9 = vsyncpa [#allocation3 + $0x1], 0 }
   0x2   :  { %10 = vsyncpa [#allocation4], 0 }
   0x3   :  { %12 = vsyncpa [#allocation4 + $0x1], 0  ;;  %s423_s9 = smov 0   ;;  %s425_s10 = smov 0  }
   0x4   :  { %s427_s11 = smov 0   ;;  %s429_s12 = smov 0  }
   0x5 LB: > { %s444_s13 = sadd.s32 4294967295, %s404_s12   ;;  %s253_s14 = sadd.s32 4294967294, %s404_s12   ;;  %s404_s12 = sphi %s429_s12, %s586_s12   ;;  %s400_s11 = sphi %s427_s11, %s585_s11   ;;  %s396_s10 = sphi %s425_s10, %s584_s10   ;;  %s392_s9 = sphi %s423_s9, %s583_s9  }
   0x6   : > { %s448_s15 = sadd.s32 1, %s404_s12   ;;  %s25_s16 = sadd.s32 1, %s400_s11 }
   0x7   : > { %s22_s17 = ssub.s32 %s404_s12, %s448_s15  ;;  %p32_p0 = scmp.ne.s32.totalorder %s400_s11, %s396_s10 }
   0x8   : > { %p23_p1 = scmp.eq.s32.totalorder %s22_s17, 0  ;;  %p33_p2 = scmp.eq.s32.totalorder %s404_s12, 0 }
   0x9   : > { %p38_p3 = scmp.ne.s32.totalorder %s396_s10, %s392_s9  ;;  %p39_p4 = scmp.eq.s32.totalorder %s444_s13, 0 }
   0xa   : > { %s460_s18 = scalar_select %p23_p1, %s400_s11, %s25_s16  }
   0xb   : > { %p462_p5 = por %p33_p2, %p32_p0  ;;  %p466_p6 = por %p39_p4, %p38_p3 }
   0xc   : > { %p83_p7 = scmp.eq.s32.totalorder %s444_s13, 1  ;;  %p89_p8 = scmp.eq.s32.totalorder %s253_s14, 1 }
   0xd   : > { %s573_s20 = scalar_select %p466_p6, 1, 0 }
   0xe   : > { %p278_p10 = scmp.lt.s32.totalorder %s404_s12, 2  ;;  %p473_p11 = por %p83_p7, %p32_p0 }
   0xf   : > { %p477_p12 = por %p89_p8, %p38_p3  ;;  %s112_s23 = sand.u32 1, %s400_s11  }
  0x10   : > { %s574_s21 = scalar_select %p473_p11, 1, 0 }
  0x11   : > { %s575_s22 = scalar_select %p477_p12, 1, 0 }
  0x12   : > { %s257_s24 = sshll.u32 %s404_s12, 7  ;;  %s256_s25 = sshll.u32 %s112_s23, 3 }
  0x13   : > { %s486_s28 = scalar_lea.hbm %s567_s0, %s257_s24  ;;  %s116_s29 = scalar_lea.vmem [#allocation2], %s256_s25 }
  0x14   : > { %s123_s30 = sshll.u32 %s116_s29, 4  ;;  %p490_p13 = pnand %p278_p10, %p462_p5  ;;  %s494_s30 = int_to_ptr.vmem [resolvable:$true] %s123_s30 }
  0x15   : > { %s113_s4 = scalar_lea.sflag [#allocation3], %s112_s23  ;;  %s312_s5 = scalar_lea.hbm %s486_s28, 128 }
  0x16   : > { %p313_p2 = scmp.ne.s32.totalorder %s486_s28, %s312_s5  ;;  %p314_p3 = pneg %p490_p13 }
  0x17   : > { %s317_s8 = scalar_lea.hbm %s567_s0, 256  ;;  %p318_p5 = scmp.lt.s32.totalorder %s486_s28, %s567_s0 }
  0x18   : > { %p315_p4 = pnand %p314_p3, %p313_p2  ;;  %p319_p8 = scmp.lt.s32.totalorder %s317_s8, %s312_s5 }
  0x1a   : > { %p316_p7 = pneg %p315_p4  ;;  %p320_p10 = por %p319_p8, %p318_p5 }
  0x1c   : > { %p321_p9 = pnand %p320_p10, %p316_p7 }
  0x1e   : > { %324 = shalt.err (!%p321_p9)
}
  0x1f   : > { %s325_s17 = scalar_lea.vmem %s494_s30, 128  ;;  %s406_s19 = smov [#allocation2]  }
  0x20   : > { %p326_p0 = scmp.ne.s32.totalorder %s494_s30, %s325_s17  ;;  %s330_s23 = sshll.u32 %s406_s19, 4  ;;  %s331_s23 = int_to_ptr.vmem [resolvable:$false] %s330_s23 }
  0x21   : > { %s332_s24 = scalar_lea.vmem %s331_s23, 256  ;;  %p333_p4 = scmp.lt.s32.totalorder %s494_s30, %s331_s23 }
  0x22   : > { %p328_p1 = pnand %p326_p0, %p314_p3  ;;  %p334_p12 = scmp.lt.s32.totalorder %s332_s24, %s325_s17 }
  0x24   : > { %p329_p2 = pneg %p328_p1  ;;  %p335_p11 = por %p334_p12, %p333_p4 }
  0x26   : > { %p336_p6 = pnand %p335_p11, %p329_p2 }
  0x28   : > { %339 = shalt.err (!%p336_p6)
}
  0x29   : > { %273 = dma.hbm_to_vmem [thread:$0]  (!%p490_p13), %s486_s28, 128, %s494_s30, %s113_s4  }
  0x2a   : > { %p577_p9 = scmp.lt.s32.totalorder %s404_s12, 3  ;;  %p578_p7 = scmp.ge.s32.totalorder %s404_s12, 1 }
  0x2c   : > { %p129_p0 = pnand %p578_p7, %p577_p9 }
  0x2d   : > { %s521_s25 = sand.u32 (!%p129_p0), 1, %s396_s10   ;;  %p579_p6 = scmp.ne.s32.totalorder (!%p129_p0), %s573_s20, 0 }
  0x2e   : > { %132 = sbr.rel (%p129_p0) target bundleno = 77 (0x4d), region = 28  ;;  %s259_s26 = sshll.u32 (!%p129_p0), %s521_s25, 3 }
  0x2f   : > { %s135_s27 = scalar_lea.sflag (!%p129_p0), [#allocation3], %s521_s25  ;;  %s138_s29 = scalar_lea.vmem (!%p129_p0), [#allocation2], %s259_s26 }
  0x33   : > { %383 = dma.done.wait (%p579_p6), %s135_s27, 128  }
  0x34   : > { %385 = vsyncadd (%p579_p6), %s135_s27, 4294967168  ;;  %s158_s28 = scalar_lea.vmem [#allocation5], %s259_s26  ;;  %s263_s3 = sshll.u32 %s444_s13, 7  ;;  %v159_v0 = vld [vmem:[%s138_s29] sm:$0xff] }
  0x35   : > { %s183_s30 = sshll.u32 %s158_s28, 4  ;;  %v261_v1 = vld [vmem:[%s568_s1] ss:$0 sm:$0xff]  ;;  %s181_s8 = scalar_lea.hbm %s569_s2, %s263_s3  ;;  %s184_s30 = int_to_ptr.vmem [resolvable:$true] %s183_s30 }
  0x36   : > { %v167_v2 = vadd.f32 %v261_v1, %v159_v0  ;;  %s170_s20 = scalar_lea.sflag [#allocation4], %s521_s25  ;;  %s340_s14 = scalar_lea.vmem %s184_s30, 128 }
  0x37   : > { %p341_p11 = scmp.ne.s32.totalorder %s184_s30, %s340_s14  ;;  %p580_p12 = scmp.ne.s32.totalorder %s574_s21, 0 }
  0x38   : > { %168 = vst [vmem:[%s158_s28] sm:$0xff] %v167_v2  ;;  %s407_s16 = smov [#allocation5]  }
  0x39   : > { %p342_p13 = pnand %p341_p11, %p580_p12  ;;  %s344_s13 = sshll.u32 %s407_s16, 4  ;;  %s345_s13 = int_to_ptr.vmem [resolvable:$false] %s344_s13 }
  0x3a   : > { %s346_s17 = scalar_lea.vmem %s345_s13, 256  ;;  %p347_p3 = scmp.lt.s32.totalorder %s184_s30, %s345_s13 }
  0x3b   : > { %p343_p1 = pneg %p342_p13  ;;  %p348_p5 = scmp.lt.s32.totalorder %s346_s17, %s340_s14 }
  0x3d   : > { %p349_p8 = por %p348_p5, %p347_p3 }
  0x3f   : > { %p350_p10 = pnand %p349_p8, %p343_p1 }
  0x41   : > { %353 = shalt.err (!%p350_p10)
}
  0x42   : > { %s354_s19 = scalar_lea.hbm %s181_s8, 128  ;;  %s358_s25 = scalar_lea.hbm %s569_s2, 256 }
  0x43   : > { %p355_p2 = scmp.ne.s32.totalorder %s181_s8, %s354_s19  ;;  %p359_p7 = scmp.lt.s32.totalorder %s181_s8, %s569_s2 }
  0x44   : > { %p360_p0 = scmp.lt.s32.totalorder %s358_s25, %s354_s19 }
  0x45   : > { %p356_p4 = pnand %p355_p2, %p580_p12 }
  0x46   : > { %p361_p6 = por %p360_p0, %p359_p7 }
  0x47   : > { %p357_p9 = pneg %p356_p4 }
  0x49   : > { %p362_p11 = pnand %p361_p6, %p357_p9 }
  0x4b   : > { %365 = shalt.err (!%p362_p11)
}
  0x4c   : > { %268 = dma.vmem_to_hbm [thread:$0]  (%p580_p12), %s184_s30, 128, %s181_s8, %s170_s20  }
  0x4d PF: > { %s195_s29 = sand.u32 1, %s392_s9   ;;  %p581_p13 = scmp.ne.s32.totalorder %s575_s22, 0 }
  0x4e   : > { %p582_p1 = scmp.ge.s32.totalorder %s404_s12, 2  ;;  %s196_s28 = scalar_lea.sflag [#allocation4], %s195_s29 }
  0x50   : > { %p275_p3 = pnand %p582_p1, %p581_p13 }
  0x52   : > { %p276_p5 = pneg %p275_p3 }
  0x54   : > { %387 = dma.done.wait (%p276_p5), %s196_s28, 128  }
  0x55   : > { %389 = vsyncadd (%p276_p5), %s196_s28, 4294967168  ;;  %p15_p8 = scmp.ge.s32.totalorder %s448_s15, 4   ;;  %s583_s9 = smov %s396_s10 }
  0x56   : > { %s584_s10 = smov %s400_s11  ;;  %s585_s11 = smov %s460_s18 }
  0x57   : > { %s586_s12 = smov %s448_s15  ;;  %17 = sbr.rel (!%p15_p8) target bundleno = 5 (0x5), region = 73 }
  0x5c   :  { %201 = vsyncpa [#allocation3], 1 }
  0x5d   :  { %203 = vsyncpa [#allocation3 + $0x1], 1 }
  0x5e   :  { %204 = vsyncpa [#allocation4], 1 }
  0x5f   :  { %206 = vsyncpa [#allocation4 + $0x1], 1 }

// kernel: tpu_custom_call.1
= control target key start
LH: loop header
LB: loop body
LE: loop exit
PB: predicated region body
PF: predicated region fallthrough
CT: control target
= control target key end

     0   :  { %11 = vsyncpa [#allocation3], 0  ;;  %s407_s0 = inlined_call_operand.hbm [shape: f32[16,32], index: 0, kind: input, shape index: {}]   ;;  %s408_s1 = inlined_call_operand.hbm [shape: f32[16,32], index: 1, kind: input, shape index: {}]   ;;  %s409_s2 = inlined_call_operand.hbm [shape: bf16[32,32], index: 2, kind: input, shape index: {}]   ;;  %s410_s3 = inlined_call_operand.vmem [shape: f32[1,32], index: 3, kind: input, shape index: {}]   ;;  %s411_s4 = inlined_call_operand.vmem [shape: f32[1,32], index: 4, kind: input, shape index: {}]   ;;  %s412_s5 = inlined_call_operand.vmem [shape: f32[1,32], index: 5, kind: input, shape index: {}]   ;;  %s413_s6 = inlined_call_operand.hbm [shape: f32[16,32], index: 6, kind: output, shape index: {}]  }
   0x1   :  { %12 = vsyncpa [#allocation6], 0 }
   0x2   :  { %13 = vsyncpa [#allocation4], 0  ;;  %s325_s21 = smov [#allocation5]   ;;  %s326_s23 = smov [#allocation2]  }
   0x3   :  { %s31_s22 = sshll.u32 %s325_s21, 4  ;;  %s19_s24 = sshll.u32 %s326_s23, 4  ;;  %s32_s22 = int_to_ptr.vmem [resolvable:$true] %s31_s22  ;;  %s20_s24 = int_to_ptr.vmem [resolvable:$true] %s19_s24 }
   0x4   :  { %s247_s25 = scalar_lea.vmem %s32_s22, 256  ;;  %p252_p1 = scmp.lt.s32.totalorder %s32_s22, %s32_s22 }
   0x5   :  { %p248_p0 = scmp.ne.s32.totalorder %s32_s22, %s247_s25  ;;  %p253_p2 = scmp.lt.s32.totalorder %s247_s25, %s247_s25 }
   0x7   :  { %p254_p3 = por %p253_p2, %p252_p1 }
   0x9   :  { %p255_p4 = pnand %p254_p3, %p248_p0 }
   0xb   :  { %258 = shalt.err (!%p255_p4)
}
   0xc   :  { %s327_s26 = smov 128   ;;  %s328_s27 = smov 8  }
   0xd   :  { %37 = dma.hbm_to_vmem [thread:$0]  %s408_s1, 256, %s32_s22, [#allocation6], %s327_s26, %s327_s26, %s328_s27  }
   0xe   :  { %s267_s30 = scalar_lea.vmem %s20_s24, 256  ;;  %p272_p6 = scmp.lt.s32.totalorder %s20_s24, %s20_s24 }
   0xf   :  { %p268_p5 = scmp.ne.s32.totalorder %s20_s24, %s267_s30  ;;  %p273_p7 = scmp.lt.s32.totalorder %s267_s30, %s267_s30 }
  0x11   :  { %p274_p8 = por %p273_p7, %p272_p6 }
  0x13   :  { %p275_p9 = pnand %p274_p8, %p268_p5 }
  0x15   :  { %278 = shalt.err (!%p275_p9)
}
  0x16   :  { %25 = dma.hbm_to_vmem [thread:$0]  %s407_s0, 256, %s20_s24, [#allocation3], %s327_s26, %s327_s26, %s328_s27  }
  0x17   :  { %s329_s9 = smov [#allocation7]  }
  0x18   :  { %s43_s10 = sshll.u32 %s329_s9, 4  ;;  %s44_s10 = int_to_ptr.vmem [resolvable:$true] %s43_s10 }
  0x19   :  { %s287_s11 = scalar_lea.vmem %s44_s10, 256  ;;  %p292_p11 = scmp.lt.s32.totalorder %s44_s10, %s44_s10 }
  0x1a   :  { %p288_p10 = scmp.ne.s32.totalorder %s44_s10, %s287_s11  ;;  %p293_p12 = scmp.lt.s32.totalorder %s287_s11, %s287_s11 }
  0x1c   :  { %p294_p13 = por %p293_p12, %p292_p11 }
  0x1e   :  { %p295_p0 = pnand %p294_p13, %p288_p10 }
  0x20   :  { %298 = shalt.err (!%p295_p0)
}
  0x21   :  { %s330_s1 = smov 64   ;;  %s331_s12 = smov 4  }
  0x22   :  { %49 = dma.hbm_to_vmem [thread:$0]  %s409_s2, 256, %s44_s10, [#allocation6], %s330_s1, %s330_s1, %s331_s12  }
  0x23   :  { %319 = dma.done.wait [#allocation3], 256  }
  0x24   :  { %320 = vsyncadd [#allocation3], 4294967040 }
  0x25   :  { %321 = dma.done.wait [#allocation6], 512  }
  0x26   :  { %322 = vsyncadd [#allocation6], 4294966784  ;;  %v332_v0 = vmov 0.0   ;;  %vm333_vm0 = vmmov 0   ;;  %v233_v1 = vld [vmem:[#allocation7 + $0x8] sm:$0xff]   ;;  %v234_v2 = vld [vmem:[#allocation7] sm:$0xff]  }
  0x27   :  { %215 = vmatprep.subr.bf16.mxu0 %v332_v0  ;;  %219 = vmatprep.mubr.msk.bf16.mxu0 %vm333_vm0, %v332_v0  ;;  %v66_v3 = vld [vmem:[#allocation2] sm:$0xff]  ;;  %v67_v4 = vld [vmem:[#allocation2 + $0x8] sm:$0xff]  ;;  %vm92_vm1 = vcmask 261120   ;;  %v137_v8 = vld [vmem:[#allocation5] sm:$0xff]  ;;  %s334_s18 = smov [#allocation8]  }
  0x28   :  { %216 = vmatpush3.bf16.msra.mxu0 %v233_v1  ;;  %v68_v5 = vpack.c.bf16 %v67_v4, %v66_v3  ;;  %v206_v6 = vld [vmem:[%s410_s3] ss:$0 sm:$0xff]  ;;  %v138_v13 = vld [vmem:[#allocation5 + $0x8] sm:$0xff]  ;;  %s193_s19 = sshll.u32 %s334_s18, 4  ;;  %s194_s19 = int_to_ptr.vmem [resolvable:$true] %s193_s19 }
  0x29   :  { %217 = vmatprep.subr.bf16.mxu0 %v332_v0  ;;  %v210_v36 = vld [vmem:[%s411_s4] ss:$0 sm:$0xff]  ;;  %s299_s20 = scalar_lea.vmem %s194_s19, 256  ;;  %p304_p2 = scmp.lt.s32.totalorder %s194_s19, %s194_s19 }
  0x2a   :  { %v211_v38 = vld [vmem:[%s412_s5] ss:$0 sm:$0xff]  ;;  %p300_p1 = scmp.ne.s32.totalorder %s194_s19, %s299_s20  ;;  %p305_p3 = scmp.lt.s32.totalorder %s299_s20, %s299_s20 }
  0x2c   :  { %218 = vmatpush3.bf16.msra.mxu0 %v234_v2  ;;  %p306_p4 = por %p305_p3, %p304_p2 }
  0x2e   :  { %p307_p5 = pnand %p306_p4, %p300_p1 }
  0x2f   :  { %220 = vmatmul.mubr.msk.bf16.vlgmr.msra.gmra.mxu0 %vm92_vm1, %v68_v5 }
  0xef   :  { %v130_v7 = vpop.f32.mrf.mxu0 }
  0xf0   :  { %v131_v9 = vadd.f32 %v206_v6, %v130_v7 }
  0xf1   :  { %v221_v10 = vpop.f32.mrf.mxu0 }
  0xf2   :  { %v139_v11 = vadd.f32 %v137_v8, %v131_v9 }
  0xf3   :  { %v133_v12 = vpop.f32.mrf.mxu0 }
  0xf4   :  { %v134_v14 = vadd.f32 %v206_v6, %v133_v12  ;;  %v141_v15 = vsel %vm92_vm1, %v139_v11, 0.0 }
  0xf5   :  { %142 = vadd.xlane.f32.xlu0 %v141_v15  ;;  %v222_v16 = vpop.f32.mrf.mxu0 }
  0xf6   :  { %v140_v17 = vadd.f32 %v138_v13, %v134_v14 }
  0xf8   :  { %v144_v18 = vsel %vm92_vm1, %v140_v17, 0.0 }
  0xf9   :  { %145 = vadd.xlane.f32.xlu0 %v144_v18 }
 0x17e   :  { %v143_v19 = vpop.xlane.xlu0 %142 }
 0x17f   :  { %v148_v20 = vmul.f32 0.03125, %v143_v19 }
 0x181   :  { %v150_v21 = vsub.f32 %v139_v11, %v148_v20 }
 0x182   :  { %v146_v22 = vpop.xlane.xlu0 %145 }
 0x183   :  { %v149_v23 = vmul.f32 0.03125, %v146_v22  ;;  %v152_v24 = vmul.f32 %v150_v21, %v150_v21 }
 0x185   :  { %v151_v25 = vsub.f32 %v140_v17, %v149_v23  ;;  %v154_v26 = vsel %vm92_vm1, %v152_v24, 0.0 }
 0x186   :  { %155 = vadd.xlane.f32.xlu1 %v154_v26 }
 0x187   :  { %v153_v27 = vmul.f32 %v151_v25, %v151_v25 }
 0x189   :  { %v157_v28 = vsel %vm92_vm1, %v153_v27, 0.0 }
 0x18a   :  { %158 = vadd.xlane.f32.xlu1 %v157_v28 }
 0x20f   :  { %v156_v29 = vpop.xlane.xlu1 %155 }
 0x210   :  { %v160_v30 = vmul.f32 0.03125, %v156_v29 }
 0x212   :  { %v162_v31 = vadd.f32 1e-12, %v160_v30 }
 0x213   :  { %v159_v32 = vpop.xlane.xlu1 %158 }
 0x214   :  { %235 = vrsqrt.f32 %v162_v31  ;;  %v161_v33 = vmul.f32 0.03125, %v159_v32 }
 0x216   :  { %v163_v34 = vadd.f32 1e-12, %v161_v33 }
 0x218   :  { %237 = vrsqrt.f32 %v163_v34 }
 0x221   :  { %v236_v35 = vpop.eup %235 }
 0x222   :  { %v166_v37 = vmul.f32 %v236_v35, %v150_v21 }
 0x224   :  { %v175_v39 = vmul.f32 %v210_v36, %v166_v37 }
 0x225   :  { %v238_v40 = vpop.eup %237 }
 0x226   :  { %v167_v41 = vmul.f32 %v238_v40, %v151_v25  ;;  %v184_v42 = vadd.f32 %v211_v38, %v175_v39 }
 0x228   :  { %v176_v43 = vmul.f32 %v210_v36, %v167_v41  ;;  %186 = vst.msk [vmem:[#allocation8] sm:$0xff] %vm92_vm1, %v184_v42 }
 0x22a   :  { %v185_v44 = vadd.f32 %v211_v38, %v176_v43 }
 0x22c   :  { %187 = vst.msk [vmem:[#allocation8 + $0x8] sm:$0xff] %vm92_vm1, %v185_v44 }
 0x22d   :  { %310 = shalt.err (!%p307_p5)
}
 0x22e   :  { %199 = dma.vmem_to_hbm [thread:$0]  %s194_s19, 256, %s413_s6, [#allocation4], %s327_s26, %s327_s26, %s328_s27  }
 0x22f   :  { %323 = dma.done.wait [#allocation4], 256  }
 0x230   :  { %324 = vsyncadd [#allocation4], 4294967040 }
 0x231   :  { %203 = vsyncpa [#allocation3], 1 }
 0x232   :  { %204 = vsyncpa [#allocation6], 1 }
 0x233   :  { %205 = vsyncpa [#allocation4], 1 }

</bundles_post_ra>
